<compile_context>
chip_gen: v7x
topology: tpu7x:2x2x1
jax: 0.10.0
libtpu: 0.0.40
codegen_flags: <defaults>
</compile_context>

<pallas_src>
import jax
import jax.numpy as jnp
from jax.experimental import pallas as pl
from jax.experimental.pallas import tpu as pltpu

K_RAW = 28 * 28   # 784
K_PAD = 896       # 7 * 128 (lane-dense contraction dim for layer 1)
H = 128           # effective hidden width (only cols 0..127 of layer 1 are used)
N_OUT = 10
N_PAD = 128       # lane-dense padded logits width
TB_MAX = 1024     # max batch-tile rows (VMEM-safe on v7x)


def mlp_kernel(x_ref, w1_ref, b1_ref, w2_ref, b2_ref, w3_ref, b3_ref, o_ref):
    """Fused 3-layer MLP on one batch tile. bf16 MXU inputs, f32 accumulate/VPU."""
    x = x_ref[...]                                                    # (TB, 896) bf16

    # Layer 1: Linear(784 -> 128 effective) + ReLU
    h1 = jnp.dot(x, w1_ref[...], preferred_element_type=jnp.float32) + b1_ref[...]
    h1 = jnp.maximum(h1, 0.0)                                         # (TB, 128) f32

    # Layer 2: Linear(128 -> 128) + ReLU
    h2 = jnp.dot(h1.astype(jnp.bfloat16), w2_ref[...],
                 preferred_element_type=jnp.float32) + b2_ref[...]
    h2 = jnp.maximum(h2, 0.0)                                         # (TB, 128) f32

    # Layer 3: Linear(128 -> 10), zero-padded to 128 output lanes
    o_ref[...] = jnp.dot(h2.astype(jnp.bfloat16), w3_ref[...],
                         preferred_element_type=jnp.float32) + b3_ref[...]


def _prep_params(params):
    """Slice/pad/cast PyTorch-shaped params into kernel-friendly operands."""
    w1, b1, w2, b2, w3, b3 = params
    # Layer 1: keep only the 128 columns consumed downstream; pad K to 896.
    w1e = jnp.zeros((K_PAD, H), jnp.bfloat16).at[:K_RAW, :].set(
        w1[:, :H].astype(jnp.bfloat16))
    b1e = b1[:, :H].astype(jnp.float32)
    w2e = w2.astype(jnp.bfloat16)
    b2e = b2.astype(jnp.float32)
    # Layer 3: zero-pad output columns 10 -> 128 (exact; padded bias entries are 0).
    w3e = jnp.zeros((H, N_PAD), jnp.bfloat16).at[:, :N_OUT].set(w3.astype(jnp.bfloat16))
    b3e = jnp.zeros((1, N_PAD), jnp.float32).at[:, :N_OUT].set(b3.astype(jnp.float32))
    return w1e, b1e, w2e, b2e, w3e, b3e


@jax.jit
def fashion_mlp_forward(x_nchw, params):
    """x_nchw: (B, 1, 28, 28) float32. Returns logits (B, 10) float32."""
    w1e, b1e, w2e, b2e, w3e, b3e = _prep_params(params)

    B = x_nchw.shape[0]
    x2d = x_nchw.reshape(B, -1)                               # nn.Flatten on NCHW

    # Batch tiling: round rows up to bf16 sublane granularity, cap the tile at
    # TB_MAX rows so double-buffered x tiles stay small even on v7x.
    B16 = ((B + 15) // 16) * 16
    TB = min(B16, TB_MAX)
    BP = ((B + TB - 1) // TB) * TB

    # Single staging pass: zero-padded bf16 input (rows B..BP and cols 784..896 are 0).
    xp = jnp.zeros((BP, K_PAD), jnp.bfloat16).at[:B, :K_RAW].set(
        x2d.astype(jnp.bfloat16))

    out = pl.pallas_call(
        mlp_kernel,
        out_shape=jax.ShapeDtypeStruct((BP, N_PAD), jnp.float32),
        grid_spec=pltpu.PrefetchScalarGridSpec(
            num_scalar_prefetch=0,
            grid=(BP // TB,),
            in_specs=[
                pl.BlockSpec((TB, K_PAD), lambda i: (i, 0)),   # x tile (pipelined)
                pl.BlockSpec((K_PAD, H), lambda i: (0, 0)),    # W1 (resident)
                pl.BlockSpec((1, H), lambda i: (0, 0)),        # b1
                pl.BlockSpec((H, H), lambda i: (0, 0)),        # W2
                pl.BlockSpec((1, H), lambda i: (0, 0)),        # b2
                pl.BlockSpec((H, N_PAD), lambda i: (0, 0)),    # W3 (padded)
                pl.BlockSpec((1, N_PAD), lambda i: (0, 0)),    # b3 (padded)
            ],
            out_specs=pl.BlockSpec((TB, N_PAD), lambda i: (i, 0)),
        ),
        compiler_params=pltpu.CompilerParams(
            dimension_semantics=("parallel",),   # batch tiles split across v7x cores
        ),
    )(xp, w1e, b1e, w2e, b2e, w3e, b3e)

    return out[:B, :N_OUT]


def init_params(key):
    """PyTorch nn.Linear default init (U[-1/sqrt(fan_in), 1/sqrt(fan_in)]).

    Weights stored transposed vs PyTorch, i.e. (in_features, out_features);
    biases kept 2-D (1, out_features). Declared shapes match the module.
    """
    k1, k2, k3, k4, k5, k6 = jax.random.split(key, 6)

    def lin(kw, kb, fan_in, fan_out):
        bound = 1.0 / jnp.sqrt(jnp.float32(fan_in))
        w = jax.random.uniform(kw, (fan_in, fan_out), jnp.float32, -bound, bound)
        b = jax.random.uniform(kb, (1, fan_out), jnp.float32, -bound, bound)
        return w, b

    w1, b1 = lin(k1, k2, 28 * 28, 512)   # nn.Linear(784, 512)
    w2, b2 = lin(k3, k4, 128, 128)       # nn.Linear(128, 128)
    w3, b3 = lin(k5, k6, 128, 10)        # nn.Linear(128, 10)
    return (w1, b1, w2, b2, w3, b3)


if __name__ == "__main__":
    key = jax.random.PRNGKey(0)
    kx, kp = jax.random.split(key)

    B = 4
    x = jax.random.normal(kx, (B, 1, 28, 28), dtype=jnp.float32)  # NCHW, like FashionMNIST
    params = init_params(kp)

    logits = fashion_mlp_forward(x, params)
    jax.block_until_ready(logits)

    # Pure-JAX reference with the same bridged semantics and bf16/f32-accumulate math.
    w1, b1, w2, b2, w3, b3 = params
    x2d = x.reshape(B, -1)
    h1 = jnp.maximum(
        jnp.dot(x2d.astype(jnp.bfloat16), w1[:, :H].astype(jnp.bfloat16),
                preferred_element_type=jnp.float32) + b1[:, :H], 0.0)
    h2 = jnp.maximum(
        jnp.dot(h1.astype(jnp.bfloat16), w2.astype(jnp.bfloat16),
                preferred_element_type=jnp.float32) + b2, 0.0)
    ref = jnp.dot(h2.astype(jnp.bfloat16), w3.astype(jnp.bfloat16),
                  preferred_element_type=jnp.float32) + b3

    assert logits.shape == (B, 10)
    assert jnp.allclose(logits, ref, atol=2e-2, rtol=2e-2), \
        float(jnp.max(jnp.abs(logits - ref)))

    print("KERNEL_OK")
</pallas_src>

<mosaic_0001>
module attributes {stable_mosaic.version = 11 : i64} {
  func.func @mlp_kernel(%arg0: i32, %arg1: memref<16x896xbf16, #tpu.memory_space<vmem>>, %arg2: memref<896x128xbf16, #tpu.memory_space<vmem>>, %arg3: memref<1x128xf32, #tpu.memory_space<vmem>>, %arg4: memref<128x128xbf16, #tpu.memory_space<vmem>>, %arg5: memref<1x128xf32, #tpu.memory_space<vmem>>, %arg6: memref<128x128xbf16, #tpu.memory_space<vmem>>, %arg7: memref<1x128xf32, #tpu.memory_space<vmem>>, %arg8: memref<16x128xf32, #tpu.memory_space<vmem>>) attributes {dimension_semantics = [#tpu.dimension_semantics<parallel>], iteration_bounds = array<i64: 1>, scalar_prefetch = 0 : i64, scratch_operands = 0 : i64, tpu.core_type = #tpu.core_type<tc>, window_params = [{transform_indices = @transform_0, window_bounds = array<i64: 16, 896>}, {pipeline_mode = #tpu.pipeline_mode<synchronous>, transform_indices = @transform_1, window_bounds = array<i64: 896, 128>}, {pipeline_mode = #tpu.pipeline_mode<synchronous>, transform_indices = @transform_2, window_bounds = array<i64: 1, 128>}, {pipeline_mode = #tpu.pipeline_mode<synchronous>, transform_indices = @transform_3, window_bounds = array<i64: 128, 128>}, {pipeline_mode = #tpu.pipeline_mode<synchronous>, transform_indices = @transform_4, window_bounds = array<i64: 1, 128>}, {pipeline_mode = #tpu.pipeline_mode<synchronous>, transform_indices = @transform_5, window_bounds = array<i64: 128, 128>}, {pipeline_mode = #tpu.pipeline_mode<synchronous>, transform_indices = @transform_6, window_bounds = array<i64: 1, 128>}, {transform_indices = @transform_7, window_bounds = array<i64: 16, 128>}]} {
    %c0 = arith.constant 0 : index
    %c0_0 = arith.constant 0 : index
    %0 = vector.load %arg1[%c0, %c0_0] : memref<16x896xbf16, #tpu.memory_space<vmem>>, vector<16x896xbf16>
    %c0_1 = arith.constant 0 : index
    %c0_2 = arith.constant 0 : index
    %1 = vector.load %arg2[%c0_1, %c0_2] : memref<896x128xbf16, #tpu.memory_space<vmem>>, vector<896x128xbf16>
    %cst = arith.constant dense<0.000000e+00> : vector<16x128xf32>
    %2 = tpu.matmul %0, %1, %cst {dimension_numbers = #tpu.dot_dimension_numbers<[1], [0], [0], [1], [0, 0, 1, 1], [], []>} : vector<16x896xbf16>, vector<896x128xbf16>, vector<16x128xf32> -> vector<16x128xf32>
    %c0_3 = arith.constant 0 : index
    %c0_4 = arith.constant 0 : index
    %3 = vector.load %arg3[%c0_3, %c0_4] : memref<1x128xf32, #tpu.memory_space<vmem>>, vector<1x128xf32>
    %4 = vector.broadcast %3 : vector<1x128xf32> to vector<16x128xf32>
    %5 = arith.addf %2, %4 : vector<16x128xf32>
    %cst_5 = arith.constant 0.000000e+00 : f32
    %6 = vector.broadcast %cst_5 : f32 to vector<16x128xf32>
    %7 = arith.maximumf %5, %6 : vector<16x128xf32>
    %8 = arith.truncf %7 : vector<16x128xf32> to vector<16x128xbf16>
    %c0_6 = arith.constant 0 : index
    %c0_7 = arith.constant 0 : index
    %9 = vector.load %arg4[%c0_6, %c0_7] : memref<128x128xbf16, #tpu.memory_space<vmem>>, vector<128x128xbf16>
    %cst_8 = arith.constant dense<0.000000e+00> : vector<16x128xf32>
    %10 = tpu.matmul %8, %9, %cst_8 {dimension_numbers = #tpu.dot_dimension_numbers<[1], [0], [0], [1], [0, 0, 1, 1], [], []>} : vector<16x128xbf16>, vector<128x128xbf16>, vector<16x128xf32> -> vector<16x128xf32>
    %c0_9 = arith.constant 0 : index
    %c0_10 = arith.constant 0 : index
    %11 = vector.load %arg5[%c0_9, %c0_10] : memref<1x128xf32, #tpu.memory_space<vmem>>, vector<1x128xf32>
    %12 = vector.broadcast %11 : vector<1x128xf32> to vector<16x128xf32>
    %13 = arith.addf %10, %12 : vector<16x128xf32>
    %cst_11 = arith.constant 0.000000e+00 : f32
    %14 = vector.broadcast %cst_11 : f32 to vector<16x128xf32>
    %15 = arith.maximumf %13, %14 : vector<16x128xf32>
    %16 = arith.truncf %15 : vector<16x128xf32> to vector<16x128xbf16>
    %c0_12 = arith.constant 0 : index
    %c0_13 = arith.constant 0 : index
    %17 = vector.load %arg6[%c0_12, %c0_13] : memref<128x128xbf16, #tpu.memory_space<vmem>>, vector<128x128xbf16>
    %cst_14 = arith.constant dense<0.000000e+00> : vector<16x128xf32>
    %18 = tpu.matmul %16, %17, %cst_14 {dimension_numbers = #tpu.dot_dimension_numbers<[1], [0], [0], [1], [0, 0, 1, 1], [], []>} : vector<16x128xbf16>, vector<128x128xbf16>, vector<16x128xf32> -> vector<16x128xf32>
    %c0_15 = arith.constant 0 : index
    %c0_16 = arith.constant 0 : index
    %19 = vector.load %arg7[%c0_15, %c0_16] : memref<1x128xf32, #tpu.memory_space<vmem>>, vector<1x128xf32>
    %20 = vector.broadcast %19 : vector<1x128xf32> to vector<16x128xf32>
    %21 = arith.addf %18, %20 : vector<16x128xf32>
    %c0_17 = arith.constant 0 : index
    %c0_18 = arith.constant 0 : index
    %22 = vector.load %arg8[%c0_17, %c0_18] : memref<16x128xf32, #tpu.memory_space<vmem>>, vector<16x128xf32>
    tpu.vector_store %arg8[%c0_17, %c0_18], %21 {strides = array<i32>} : memref<16x128xf32, #tpu.memory_space<vmem>>, vector<16x128xf32>,
    return
  }
  func.func @transform_0(%arg0: i32) -> (i32, i32) {
    %c0_i32 = arith.constant 0 : i32
    %c0_i32_0 = arith.constant 0 : i32
    return %arg0, %c0_i32 : i32, i32
  }
  func.func @transform_1(%arg0: i32) -> (i32, i32) {
    %c0_i32 = arith.constant 0 : i32
    %c0_i32_0 = arith.constant 0 : i32
    %c0_i32_1 = arith.constant 0 : i32
    return %c0_i32, %c0_i32_0 : i32, i32
  }
  func.func @transform_2(%arg0: i32) -> (i32, i32) {
    %c0_i32 = arith.constant 0 : i32
    %c0_i32_0 = arith.constant 0 : i32
    %c0_i32_1 = arith.constant 0 : i32
    return %c0_i32, %c0_i32_0 : i32, i32
  }
  func.func @transform_3(%arg0: i32) -> (i32, i32) {
    %c0_i32 = arith.constant 0 : i32
    %c0_i32_0 = arith.constant 0 : i32
    %c0_i32_1 = arith.constant 0 : i32
    return %c0_i32, %c0_i32_0 : i32, i32
  }
  func.func @transform_4(%arg0: i32) -> (i32, i32) {
    %c0_i32 = arith.constant 0 : i32
    %c0_i32_0 = arith.constant 0 : i32
    %c0_i32_1 = arith.constant 0 : i32
    return %c0_i32, %c0_i32_0 : i32, i32
  }
  func.func @transform_5(%arg0: i32) -> (i32, i32) {
    %c0_i32 = arith.constant 0 : i32
    %c0_i32_0 = arith.constant 0 : i32
    %c0_i32_1 = arith.constant 0 : i32
    return %c0_i32, %c0_i32_0 : i32, i32
  }
  func.func @transform_6(%arg0: i32) -> (i32, i32) {
    %c0_i32 = arith.constant 0 : i32
    %c0_i32_0 = arith.constant 0 : i32
    %c0_i32_1 = arith.constant 0 : i32
    return %c0_i32, %c0_i32_0 : i32, i32
  }
  func.func @transform_7(%arg0: i32) -> (i32, i32) {
    %c0_i32 = arith.constant 0 : i32
    %c0_i32_0 = arith.constant 0 : i32
    return %arg0, %c0_i32 : i32, i32
  }
}

</mosaic_0001>

<bundles_post_ra>
// kernel: fashion_mlp_forward.1
= control target key start
LH: loop header
LB: loop body
LE: loop exit
PB: predicated region body
PF: predicated region fallthrough
CT: control target
= control target key end

     0   :  { %12 = vsyncpa [#allocation3], 0  ;;  %s1283_s24 = smov [#allocation2]   ;;  %s1617_s0 = inlined_call_operand.vmem [shape: bf16[16,896], index: 0, kind: input, shape index: {}]   ;;  %s1618_s1 = inlined_call_operand.vmem [shape: bf16[896,128], index: 1, kind: input, shape index: {}]   ;;  %s1619_s2 = inlined_call_operand.vmem [shape: f32[1,128], index: 2, kind: input, shape index: {}]   ;;  %s1620_s3 = inlined_call_operand.vmem [shape: bf16[128,128], index: 3, kind: input, shape index: {}]   ;;  %s1621_s4 = inlined_call_operand.hbm [shape: f32[1,128], index: 4, kind: input, shape index: {}]   ;;  %s1622_s5 = inlined_call_operand.vmem [shape: bf16[128,128], index: 5, kind: input, shape index: {}]   ;;  %s1623_s6 = inlined_call_operand.vmem [shape: f32[1,128], index: 6, kind: input, shape index: {}]   ;;  %s1624_s7 = inlined_call_operand.vmem [shape: f32[16,128], index: 7, kind: output, shape index: {}]  }
   0x1   :  { %s27_s25 = sshll.u32 %s1283_s24, 4  ;;  %s1259_s28 = scalar_lea.hbm %s1621_s4, 16  ;;  %s28_s25 = int_to_ptr.vmem [resolvable:$true] %s27_s25 }
   0x2   :  { %p1260_p0 = scmp.ne.s32.totalorder %s1621_s4, %s1259_s28  ;;  %p1263_p1 = scmp.lt.u32.totalorder %s1259_s28, %s1621_s4 }
   0x4   :  { %p1265_p2 = pnand %p1263_p1, %p1260_p0 }
   0x6   :  { %1268 = shalt.err (!%p1265_p2)
}
   0x7   :  { %s1269_s10 = scalar_lea.vmem %s28_s25, 16  ;;  %s1273_s11 = scalar_lea.vmem %s28_s25, 32 }
   0x8   :  { %p1270_p3 = scmp.ne.s32.totalorder %s28_s25, %s1269_s10  ;;  %p1274_p4 = scmp.lt.s32.totalorder %s28_s25, %s28_s25 }
   0x9   :  { %p1275_p5 = scmp.lt.s32.totalorder %s1273_s11, %s1269_s10 }
   0xb   :  { %p1276_p6 = por %p1275_p5, %p1274_p4 }
   0xd   :  { %p1277_p7 = pnand %p1276_p6, %p1270_p3 }
   0xf   :  { %1280 = shalt.err (!%p1277_p7)
}
  0x10   :  { %30 = dma.hbm_to_vmem [thread:$0]  %s1621_s4, 16, %s28_s25, [#allocation3]  }
  0x11   :  { %1281 = dma.done.wait [#allocation3], 16  }
  0x12   :  { %1282 = vsyncadd [#allocation3], 4294967280  ;;  %v1177_v0 = vld [vmem:[%s1618_s1 + $0x40] sm:$0xff]   ;;  %v1181_v4 = vld [vmem:[%s1618_s1 + $0x48] sm:$0xff]   ;;  %v1284_v38 = vmov 0.0   ;;  %vm1285_vm0 = vmmov 0  }
  0x13   :  { %v1178_v1 = vld [vmem:[%s1618_s1] sm:$0xff]   ;;  %1021 = vmatprep.subr.bf16.mxu0 %v1177_v0  ;;  %v1182_v5 = vld [vmem:[%s1618_s1 + $0x8] sm:$0xff]   ;;  %v1185_v8 = vld [vmem:[%s1618_s1 + $0x50] sm:$0xff]  }
  0x14   :  { %v1179_v2 = vld [vmem:[%s1618_s1 + $0xc0] sm:$0xff]   ;;  %1022 = vmatpush3.bf16.msra.mxu0 %v1178_v1  ;;  %v1183_v6 = vld [vmem:[%s1618_s1 + $0xc8] sm:$0xff]   ;;  %v1186_v9 = vld [vmem:[%s1618_s1 + $0x10] sm:$0xff]  }
  0x15   :  { %v1180_v3 = vld [vmem:[%s1618_s1 + $0x80] sm:$0xff]   ;;  %1043 = vmatprep.subr.bf16.mxu1 %v1179_v2  ;;  %1023 = vmatprep.subr.bf16.mxu0 %v1181_v4  ;;  %v1184_v7 = vld [vmem:[%s1618_s1 + $0x88] sm:$0xff]   ;;  %v1187_v10 = vld [vmem:[%s1618_s1 + $0xd0] sm:$0xff]  }
  0x16   :  { %1044 = vmatpush3.bf16.msra.mxu1 %v1180_v3  ;;  %v1188_v11 = vld [vmem:[%s1618_s1 + $0x90] sm:$0xff]   ;;  %v1189_v12 = vld [vmem:[%s1618_s1 + $0x58] sm:$0xff]   ;;  %v1193_v16 = vld [vmem:[%s1618_s1 + $0x60] sm:$0xff]  }
  0x17   :  { %1045 = vmatprep.subr.bf16.mxu1 %v1183_v6  ;;  %v1190_v13 = vld [vmem:[%s1618_s1 + $0x18] sm:$0xff]   ;;  %v1194_v17 = vld [vmem:[%s1618_s1 + $0x20] sm:$0xff]   ;;  %v1197_v20 = vld [vmem:[%s1618_s1 + $0x68] sm:$0xff]  }
  0x18   :  { %1024 = vmatpush3.bf16.msra.mxu0 %v1182_v5  ;;  %v1191_v14 = vld [vmem:[%s1618_s1 + $0xd8] sm:$0xff]   ;;  %v1195_v18 = vld [vmem:[%s1618_s1 + $0xe0] sm:$0xff]   ;;  %v1198_v21 = vld [vmem:[%s1618_s1 + $0x28] sm:$0xff]  }
  0x19   :  { %1025 = vmatprep.subr.bf16.mxu0 %v1185_v8  ;;  %v1192_v15 = vld [vmem:[%s1618_s1 + $0x98] sm:$0xff]   ;;  %v1196_v19 = vld [vmem:[%s1618_s1 + $0xa0] sm:$0xff]   ;;  %v1199_v22 = vld [vmem:[%s1618_s1 + $0xe8] sm:$0xff]  }
  0x1a   :  { %1046 = vmatpush3.bf16.msra.mxu1 %v1184_v7  ;;  %v1200_v23 = vld [vmem:[%s1618_s1 + $0xa8] sm:$0xff]   ;;  %v1201_v24 = vld [vmem:[%s1618_s1 + $0x70] sm:$0xff]   ;;  %v1205_v28 = vld [vmem:[%s1618_s1 + $0x78] sm:$0xff]  }
  0x1b   :  { %1047 = vmatprep.subr.bf16.mxu1 %v1187_v10  ;;  %v1202_v25 = vld [vmem:[%s1618_s1 + $0x30] sm:$0xff]   ;;  %v1206_v29 = vld [vmem:[%s1618_s1 + $0x38] sm:$0xff]   ;;  %v1210_v32 = vld [vmem:[%s1617_s0 + $0x4] ss:$28 sps:$4 sm:$0xff]  }
  0x1c   :  { %1026 = vmatpush3.bf16.msra.mxu0 %v1186_v9  ;;  %v1203_v26 = vld [vmem:[%s1618_s1 + $0xf0] sm:$0xff]   ;;  %v1207_v30 = vld [vmem:[%s1618_s1 + $0xf8] sm:$0xff]   ;;  %570 = vmatprep.mubr.bf16.mxu0 %v1210_v32  ;;  %v1212_v34 = vld [vmem:[%s1618_s1 + $0x140] sm:$0xff]  }
  0x1d   :  { %1027 = vmatprep.subr.bf16.mxu0 %v1189_v12  ;;  %v1204_v27 = vld [vmem:[%s1618_s1 + $0xb0] sm:$0xff]   ;;  %v1208_v31 = vld [vmem:[%s1617_s0] ss:$28 sps:$4 sm:$0xff]   ;;  %v1213_v35 = vld [vmem:[%s1617_s0 + $0x8] ss:$28 sps:$4 sm:$0xff]  }
  0x1e   :  { %1048 = vmatpush3.bf16.msra.mxu1 %v1188_v11  ;;  %v1211_v33 = vld [vmem:[%s1618_s1 + $0xb8] sm:$0xff]   ;;  %v1215_v36 = vld [vmem:[%s1617_s0 + $0xc] ss:$28 sps:$4 sm:$0xff]   ;;  %v1216_v37 = vld [vmem:[%s1618_s1 + $0x100] sm:$0xff]  }
  0x1f   :  { %1049 = vmatprep.subr.bf16.mxu1 %v1191_v14  ;;  %611 = vmatprep.mubr.bf16.mxu1 %v1215_v36  ;;  %v1217_v39 = vld [vmem:[%s1618_s1 + $0x180] sm:$0xff]   ;;  %v1218_v40 = vld [vmem:[%s1618_s1 + $0x148] sm:$0xff]   ;;  %v1221_v43 = vld [vmem:[%s1618_s1 + $0x150] sm:$0xff]  }
  0x20   :  { %1028 = vmatpush3.bf16.msra.mxu0 %v1190_v13  ;;  %v1219_v41 = vld [vmem:[%s1618_s1 + $0x108] sm:$0xff]   ;;  %v1222_v44 = vld [vmem:[%s1618_s1 + $0x110] sm:$0xff]   ;;  %v1224_v46 = vld [vmem:[%s1618_s1 + $0x158] sm:$0xff]  }
  0x21   :  { %1029 = vmatprep.subr.bf16.mxu0 %v1193_v16  ;;  %v1220_v42 = vld [vmem:[%s1618_s1 + $0x188] sm:$0xff]   ;;  %v1223_v45 = vld [vmem:[%s1618_s1 + $0x190] sm:$0xff]   ;;  %v1225_v47 = vld [vmem:[%s1618_s1 + $0x118] sm:$0xff]  }
  0x22   :  { %1050 = vmatpush3.bf16.msra.mxu1 %v1192_v15  ;;  %v1226_v48 = vld [vmem:[%s1618_s1 + $0x198] sm:$0xff]   ;;  %v1227_v49 = vld [vmem:[%s1618_s1 + $0x160] sm:$0xff]   ;;  %v1230_v52 = vld [vmem:[%s1618_s1 + $0x168] sm:$0xff]  }
  0x23   :  { %1051 = vmatprep.subr.bf16.mxu1 %v1195_v18  ;;  %v1228_v50 = vld [vmem:[%s1618_s1 + $0x120] sm:$0xff]   ;;  %v1231_v53 = vld [vmem:[%s1618_s1 + $0x128] sm:$0xff]   ;;  %v1233_v55 = vld [vmem:[%s1618_s1 + $0x170] sm:$0xff]  }
  0x24   :  { %1030 = vmatpush3.bf16.msra.mxu0 %v1194_v17  ;;  %v1229_v51 = vld [vmem:[%s1618_s1 + $0x1a0] sm:$0xff]   ;;  %v1232_v54 = vld [vmem:[%s1618_s1 + $0x1a8] sm:$0xff]   ;;  %v1234_v56 = vld [vmem:[%s1618_s1 + $0x130] sm:$0xff]  }
  0x25   :  { %1031 = vmatprep.subr.bf16.mxu0 %v1197_v20  ;;  %v1235_v57 = vld [vmem:[%s1618_s1 + $0x1b0] sm:$0xff]   ;;  %v1236_v59 = vld [vmem:[%s1618_s1 + $0x178] sm:$0xff]   ;;  %v1243_v0 = vld [vmem:[%s1620_s3] sm:$0xff]  }
  0x26   :  { %1052 = vmatpush3.bf16.msra.mxu1 %v1196_v19  ;;  %v1240_v58 = vld [vmem:[%s1617_s0 + $0x14] ss:$28 sps:$4 sm:$0xff]   ;;  %v1237_v60 = vld [vmem:[%s1618_s1 + $0x138] sm:$0xff]   ;;  %v1244_v1 = vld [vmem:[%s1620_s3 + $0x8] sm:$0xff]  }
  0x27   :  { %1053 = vmatprep.subr.bf16.mxu1 %v1199_v22  ;;  %v1241_v61 = vld [vmem:[%s1618_s1 + $0x1b8] sm:$0xff]   ;;  %v1238_v62 = vld [vmem:[%s1617_s0 + $0x10] ss:$28 sps:$4 sm:$0xff]   ;;  %v1247_v4 = vld [vmem:[%s1620_s3 + $0x20] sm:$0xff]  }
  0x28   :  { %1032 = vmatpush3.bf16.msra.mxu0 %v1198_v21  ;;  %v1242_v63 = vld [vmem:[%s1617_s0 + $0x18] ss:$28 sps:$4 sm:$0xff]   ;;  %v1248_v5 = vld [vmem:[%s1620_s3 + $0x28] sm:$0xff]   ;;  %v1251_v8 = vld [vmem:[%s1622_s5] sm:$0xff]  }
  0x29   :  { %1033 = vmatprep.subr.bf16.mxu0 %v1201_v24  ;;  %v1245_v2 = vld [vmem:[%s1620_s3 + $0x10] sm:$0xff]   ;;  %v1246_v3 = vld [vmem:[%s1620_s3 + $0x18] sm:$0xff]   ;;  %v1252_v9 = vld [vmem:[%s1622_s5 + $0x8] sm:$0xff]  }
  0x2a   :  { %1054 = vmatpush3.bf16.msra.mxu1 %v1200_v23  ;;  %v1249_v6 = vld [vmem:[%s1620_s3 + $0x30] sm:$0xff]   ;;  %v1250_v7 = vld [vmem:[%s1620_s3 + $0x38] sm:$0xff]   ;;  %v1255_v12 = vld [vmem:[%s1622_s5 + $0x20] sm:$0xff]  }
  0x2b   :  { %1055 = vmatprep.subr.bf16.mxu1 %v1203_v26  ;;  %v1253_v10 = vld [vmem:[%s1622_s5 + $0x10] sm:$0xff]   ;;  %v1254_v11 = vld [vmem:[%s1622_s5 + $0x18] sm:$0xff]   ;;  %v1256_v13 = vld [vmem:[%s1622_s5 + $0x28] sm:$0xff]  }
  0x2c   :  { %1034 = vmatpush3.bf16.msra.mxu0 %v1202_v25  ;;  %v939_v15 = vld [vmem:[%s1619_s2] ss:$0 sm:$0xff] }
  0x2d   :  { %1035 = vmatprep.subr.bf16.mxu0 %v1205_v28 }
  0x2e   :  { %1056 = vmatpush3.bf16.msra.mxu1 %v1204_v27 }
  0x2f   :  { %1057 = vmatprep.subr.bf16.mxu1 %v1207_v30 }
  0x30   :  { %1036 = vmatpush3.bf16.msra.mxu0 %v1206_v29 }
  0x31   :  { %1065 = vmatprep.subr.bf16.mxu0 %v1212_v34 }
  0x32   :  { %1058 = vmatpush3.bf16.msra.mxu1 %v1211_v33 }
  0x33   :  { %571 = vmatmul.mubr.bf16.vlgmr.msra.gmra.mrb[0].mxu0 %v1208_v31  ;;  %1114 = vmatprep.subr.bf16.mxu1 %v1284_v38 }
  0x34   :  { %1066 = vmatpush3.bf16.msra.mxu0 %v1216_v37  ;;  %652 = vmatprep.mubr.bf16.mxu0 %v1240_v58 }
  0x35   :  { %612 = vmatmul.mubr.bf16.vlgmr.msra.gmra.mrb[0].mxu1 %v1213_v35  ;;  %1067 = vmatprep.subr.bf16.mxu0 %v1218_v40 }
  0x36   :  { %1115 = vmatpush3.bf16.msra.mxu1 %v1217_v39  ;;  %1130 = vmatprep.mubr.msk.bf16.mxu1 %vm1285_vm0, %v1284_v38 }
  0x37   :  { %1116 = vmatprep.subr.bf16.mxu1 %v1284_v38 }
  0x38   :  { %1068 = vmatpush3.bf16.msra.mxu0 %v1219_v41 }
  0x39   :  { %1069 = vmatprep.subr.bf16.mxu0 %v1221_v43 }
  0x3a   :  { %1117 = vmatpush3.bf16.msra.mxu1 %v1220_v42 }
  0x3b   :  { %1118 = vmatprep.subr.bf16.mxu1 %v1284_v38 }
  0x3c   :  { %1070 = vmatpush3.bf16.msra.mxu0 %v1222_v44 }
  0x3d   :  { %1071 = vmatprep.subr.bf16.mxu0 %v1224_v46 }
  0x3e   :  { %1119 = vmatpush3.bf16.msra.mxu1 %v1223_v45 }
  0x3f   :  { %1120 = vmatprep.subr.bf16.mxu1 %v1284_v38 }
  0x40   :  { %1072 = vmatpush3.bf16.msra.mxu0 %v1225_v47 }
  0x41   :  { %1073 = vmatprep.subr.bf16.mxu0 %v1227_v49  ;;  %v1257_v49 = vld [vmem:[%s1622_s5 + $0x30] sm:$0xff]  }
  0x42   :  { %1121 = vmatpush3.bf16.msra.mxu1 %v1226_v48 }
  0x43   :  { %1122 = vmatprep.subr.bf16.mxu1 %v1284_v38 }
  0x44   :  { %1074 = vmatpush3.bf16.msra.mxu0 %v1228_v50  ;;  %v1258_v50 = vld [vmem:[%s1622_s5 + $0x38] sm:$0xff]  }
  0x45   :  { %1075 = vmatprep.subr.bf16.mxu0 %v1230_v52 }
  0x46   :  { %1123 = vmatpush3.bf16.msra.mxu1 %v1229_v51  ;;  %v1003_v51 = vld [vmem:[#allocation2] ss:$0 sm:$0xff] }
  0x47   :  { %1124 = vmatprep.subr.bf16.mxu1 %v1284_v38 }
  0x48   :  { %1076 = vmatpush3.bf16.msra.mxu0 %v1231_v53 }
  0x49   :  { %1077 = vmatprep.subr.bf16.mxu0 %v1233_v55 }
  0x4a   :  { %1125 = vmatpush3.bf16.msra.mxu1 %v1232_v54 }
  0x4b   :  { %1126 = vmatprep.subr.bf16.mxu1 %v1284_v38 }
  0x4c   :  { %1078 = vmatpush3.bf16.msra.mxu0 %v1234_v56 }
  0x4d   :  { %1079 = vmatprep.subr.bf16.mxu0 %v1236_v59 }
  0x4e   :  { %1127 = vmatpush3.bf16.msra.mxu1 %v1235_v57 }
  0x4f   :  { %1128 = vmatprep.subr.bf16.mxu1 %v1284_v38 }
  0x50   :  { %1080 = vmatpush3.bf16.msra.mxu0 %v1237_v60 }
  0x51   :  { %1134 = vmatprep.subr.bf16.mxu0 %v1284_v38 }
  0x52   :  { %1129 = vmatpush3.bf16.msra.mxu1 %v1241_v61 }
  0x53   :  { %1154 = vmatprep.subr.bf16.mxu1 %v1284_v38  ;;  %653 = vmatmul.mubr.bf16.vlgmr.msra.gmra.mrb[4].mxu0 %v1238_v62 }
  0x54   :  { %1150 = vmatprep.mubr.msk.bf16.mxu0 %vm1285_vm0, %v1284_v38  ;;  %1135 = vmatpush3.bf16.msra.mxu0 %v1243_v0 }
  0x55   :  { %1131 = vmatmul.mubr.bf16.vlgmr.msra.gmra.mrb[4].mxu1 %v1242_v63  ;;  %1136 = vmatprep.subr.bf16.mxu0 %v1284_v38 }
  0x56   :  { %1170 = vmatprep.mubr.msk.bf16.mxu1 %vm1285_vm0, %v1284_v38  ;;  %1155 = vmatpush3.bf16.msra.mxu1 %v1251_v8 }
  0x57   :  { %1156 = vmatprep.subr.bf16.mxu1 %v1284_v38 }
  0x58   :  { %1137 = vmatpush3.bf16.msra.mxu0 %v1244_v1 }
  0x59   :  { %1138 = vmatprep.subr.bf16.mxu0 %v1284_v38 }
  0x5a   :  { %1157 = vmatpush3.bf16.msra.mxu1 %v1252_v9 }
  0x5b   :  { %1158 = vmatprep.subr.bf16.mxu1 %v1284_v38 }
  0x5c   :  { %1139 = vmatpush3.bf16.msra.mxu0 %v1245_v2 }
  0x5d   :  { %1140 = vmatprep.subr.bf16.mxu0 %v1284_v38 }
  0x5e   :  { %1159 = vmatpush3.bf16.msra.mxu1 %v1253_v10 }
  0x5f   :  { %1160 = vmatprep.subr.bf16.mxu1 %v1284_v38 }
  0x60   :  { %1141 = vmatpush3.bf16.msra.mxu0 %v1246_v3 }
  0x61   :  { %1142 = vmatprep.subr.bf16.mxu0 %v1284_v38 }
  0x62   :  { %1161 = vmatpush3.bf16.msra.mxu1 %v1254_v11 }
  0x63   :  { %1162 = vmatprep.subr.bf16.mxu1 %v1284_v38 }
  0x64   :  { %1143 = vmatpush3.bf16.msra.mxu0 %v1247_v4 }
  0x65   :  { %1144 = vmatprep.subr.bf16.mxu0 %v1284_v38 }
  0x66   :  { %1163 = vmatpush3.bf16.msra.mxu1 %v1255_v12 }
  0x67   :  { %1164 = vmatprep.subr.bf16.mxu1 %v1284_v38 }
  0x68   :  { %1145 = vmatpush3.bf16.msra.mxu0 %v1248_v5 }
  0x69   :  { %1146 = vmatprep.subr.bf16.mxu0 %v1284_v38 }
  0x6a   :  { %1165 = vmatpush3.bf16.msra.mxu1 %v1256_v13 }
  0x6b   :  { %1166 = vmatprep.subr.bf16.mxu1 %v1284_v38 }
  0x6c   :  { %1147 = vmatpush3.bf16.msra.mxu0 %v1249_v6 }
  0x6d   :  { %1148 = vmatprep.subr.bf16.mxu0 %v1284_v38 }
  0x6e   :  { %1167 = vmatpush3.bf16.msra.mxu1 %v1257_v49 }
  0x6f   :  { %1168 = vmatprep.subr.bf16.mxu1 %v1284_v38  ;;  %v1012_v38 = vld [vmem:[%s1623_s6] ss:$0 sm:$0xff] }
  0x70   :  { %1149 = vmatpush3.bf16.msra.mxu0 %v1250_v7 }
  0x72   :  { %1169 = vmatpush3.bf16.msra.mxu1 %v1258_v50 }
 0x106   :  { %v1037_v14 = vpop.f32.mrb[0].mxu0 }
 0x107   :  { %v1038_v16 = vpop.f32.mrb[1].mxu0 }
 0x108   :  { %v1039_v17 = vadd.f32 %v1038_v16, %v1037_v14  ;;  %v1040_v18 = vpop.f32.mrb[2].mxu0  ;;  %v1059_v19 = vpop.f32.mrb[0].mxu1 }
 0x109   :  { %v1041_v20 = vpop.f32.mrb[3].mxu0  ;;  %v1060_v23 = vpop.f32.mrb[1].mxu1 }
 0x10a   :  { %v573_v21 = vadd.f32 %v1039_v17, %v939_v15  ;;  %v1042_v22 = vadd.f32 %v1041_v20, %v1040_v18  ;;  %v1061_v24 = vadd.f32 %v1060_v23, %v1059_v19  ;;  %v1062_v25 = vpop.f32.mrb[2].mxu1 }
 0x10b   :  { %v1063_v27 = vpop.f32.mrb[3].mxu1 }
 0x10c   :  { %v576_v26 = vadd.f32 %v1042_v22, %v939_v15  ;;  %v614_v28 = vadd.f32 %v1061_v24, %v573_v21  ;;  %v1064_v29 = vadd.f32 %v1063_v27, %v1062_v25 }
 0x10e   :  { %v617_v30 = vadd.f32 %v1064_v29, %v576_v26 }
 0x126   :  { %v1081_v31 = vpop.f32.mrb[4].mxu0 }
 0x127   :  { %v1082_v32 = vpop.f32.mrb[5].mxu0 }
 0x128   :  { %v695_v33 = vpop.f32.mrb[4].mxu1  ;;  %v1083_v34 = vadd.f32 %v1082_v32, %v1081_v31  ;;  %v1084_v35 = vpop.f32.mrb[6].mxu0 }
 0x129   :  { %v1132_v36 = vpop.f32.mrb[5].mxu1  ;;  %v1085_v37 = vpop.f32.mrb[7].mxu0 }
 0x12a   :  { %v698_v39 = vpop.f32.mrb[6].mxu1  ;;  %v655_v40 = vadd.f32 %v1083_v34, %v614_v28  ;;  %v1086_v41 = vadd.f32 %v1085_v37, %v1084_v35 }
 0x12b   :  { %v1133_v42 = vpop.f32.mrb[7].mxu1 }
 0x12c   :  { %v696_v43 = vadd.f32 %v695_v33, %v655_v40  ;;  %v658_v44 = vadd.f32 %v1086_v41, %v617_v30 }
 0x12e   :  { %v699_v45 = vadd.f32 %v698_v39, %v658_v44  ;;  %v702_v46 = vmax.f32 %v696_v43, 0.0 }
 0x130   :  { %v703_v47 = vmax.f32 %v699_v45, 0.0 }
 0x132   :  { %v704_v48 = vpack.c.bf16 %v703_v47, %v702_v46 }
 0x134   :  { %1151 = vmatmul.mubr.bf16.vlgmr.msra.gmra.mrb[8].mxu0 %v704_v48 }
 0x207   :  { %v810_v52 = vpop.f32.mrb[8].mxu0 }
 0x208   :  { %v811_v53 = vadd.f32 %v1003_v51, %v810_v52  ;;  %v1152_v54 = vpop.f32.mrb[9].mxu0 }
 0x209   :  { %v813_v55 = vpop.f32.mrb[10].mxu0 }
 0x20a   :  { %v814_v56 = vadd.f32 %v1003_v51, %v813_v55  ;;  %v1153_v57 = vpop.f32.mrb[11].mxu0  ;;  %v817_v58 = vmax.f32 %v811_v53, 0.0 }
 0x20c   :  { %v818_v59 = vmax.f32 %v814_v56, 0.0 }
 0x20e   :  { %v819_v60 = vpack.c.bf16 %v818_v59, %v817_v58 }
 0x210   :  { %1171 = vmatmul.mubr.bf16.vlgmr.msra.gmra.mrb[8].mxu1 %v819_v60 }
 0x2e3   :  { %v925_v61 = vpop.f32.mrb[8].mxu1 }
 0x2e4   :  { %v926_v62 = vadd.f32 %v1012_v38, %v925_v61  ;;  %v1172_v63 = vpop.f32.mrb[9].mxu1 }
 0x2e5   :  { %v928_v0 = vpop.f32.mrb[10].mxu1 }
 0x2e6   :  { %932 = vst [vmem:[%s1624_s7] sm:$0xff] %v926_v62  ;;  %v929_v1 = vadd.f32 %v1012_v38, %v928_v0  ;;  %v1173_v2 = vpop.f32.mrb[11].mxu1 }
 0x2e8   :  { %933 = vst [vmem:[%s1624_s7 + $0x8] sm:$0xff] %v929_v1 }
 0x2e9   :  { %938 = vsyncpa [#allocation3], 1 }

</bundles_post_ra>
